<compile_context>
chip_gen: v7x
topology: tpu7x:2x2x1
jax: 0.10.0
libtpu: 0.0.40
codegen_flags: <defaults>
</compile_context>

<pallas_src>
import functools

import jax
import jax.numpy as jnp
from jax.experimental import pallas as pl
from jax.experimental.pallas import tpu as pltpu

_LANES = 1024                     # lane-dense last dim (multiple of 128)
_MAX_TILE_ROWS = 2048             # 2048 * 1024 * 4 B = 8 MiB per f32 buffer
_OVERHEAD_ROWS = 64               # ~0.35 us fixed per-step cost, in row read+write units
_VMEM_LIMIT_BYTES = 48 * 1024 * 1024   # < 64 MiB (v7x physical), << 128 MiB (v5e/v6e)


def _round_up(a, m):
    return ((a + m - 1) // m) * m


def _plan_tiling(n):
    """Pick (rows, tile_rows, needs_pad) minimizing modeled HBM traffic + step overhead.

    Cost model (per candidate tile height t, in 'row read+write' equivalents):
      kernel traffic            : rows (= round_up(rows8, t))
      per-grid-step overhead    : grid_len * _OVERHEAD_ROWS
      host pad + tail slice     : + 2 * rows   (only if the slab must be padded)
      single-tile penalty       : + rows // 2  (leaves one v7x TensorCore idle)
    """
    rows_min = max(1, pl.cdiv(n, _LANES))
    rows8 = _round_up(rows_min, 8)            # sublane multiple of 8

    candidates = {8, 16, 32, 64, 128, 256, 512, 1024, 2048}
    for frac in (1, 2, 4):                    # whole / half / quarter slab tiles
        t = _round_up(pl.cdiv(rows8, frac), 8)
        if 8 <= t <= _MAX_TILE_ROWS:
            candidates.add(t)

    best = None
    for t in sorted(candidates):
        rows = _round_up(rows8, t)
        grid_len = rows // t
        needs_pad = (rows * _LANES) != n
        cost = rows + grid_len * _OVERHEAD_ROWS
        if needs_pad:
            cost += 2 * rows
        if grid_len == 1 and rows8 > 8:
            cost += rows // 2
        if best is None or cost < best[0]:
            best = (cost, t, rows, needs_pad)

    _, tile_rows, rows, needs_pad = best
    return rows, tile_rows, needs_pad


def _linreg_kernel(x_ref, w_ref, b_ref, o_ref):
    # y = x * w + b : scalar-broadcast FMA on the VPU.
    # w_ref / b_ref are SMEM scalars (scalar path, no vector-load slot used).
    w = w_ref[0]
    b = b_ref[0]
    o_ref[...] = x_ref[...] * w + b


def _forward(x, weight, bias):
    """Forward of nn.Linear(1, 1).

    x: (..., 1) f32; weight: (1, 1) f32 (PyTorch [out, in] layout); bias: (1,) f32.
    Returns an array of shape (..., 1), f32.
    """
    if x.shape[-1] != 1:
        raise ValueError(f"expected last dim 1 for nn.Linear(1, 1), got {x.shape}")
    out_shape = x.shape[:-1] + (1,)
    dtype = jnp.float32

    n = 1
    for d in x.shape:
        n *= d
    if n == 0:                                # empty-input guard (review item)
        return jnp.zeros(out_shape, dtype)

    w = weight.reshape(1).astype(dtype)       # (1,) scalar -> SMEM
    b = bias.reshape(1).astype(dtype)         # (1,) scalar -> SMEM

    rows, tile_rows, needs_pad = _plan_tiling(n)
    padded = rows * _LANES

    flat = x.reshape(-1).astype(dtype)
    if needs_pad:
        # Only the (cost-model-minimized) ragged tail is zero-padded.
        flat = jnp.pad(flat, (0, padded - n))
    x2d = flat.reshape(rows, _LANES)          # aligned path: pure bitcast, no copy

    grid = (rows // tile_rows,)

    out2d = pl.pallas_call(
        _linreg_kernel,
        out_shape=jax.ShapeDtypeStruct((rows, _LANES), dtype),
        grid=grid,
        in_specs=[
            # Lane-dense x tiles, auto double-buffered HBM<->VMEM.
            pl.BlockSpec((tile_rows, _LANES), lambda i: (i, 0)),
            # Grid-invariant scalar parameters live in SMEM (no per-tile DMA).
            pl.BlockSpec(memory_space=pltpu.MemorySpace.SMEM),
            pl.BlockSpec(memory_space=pltpu.MemorySpace.SMEM),
        ],
        out_specs=pl.BlockSpec((tile_rows, _LANES), lambda i: (i, 0)),
        compiler_params=pltpu.CompilerParams(
            # Independent row tiles: lets v7x shard across its 2 TensorCores;
            # harmless no-op on single-TC v5e/v6e.
            dimension_semantics=("parallel",),
            vmem_limit_bytes=_VMEM_LIMIT_BYTES,
        ),
        cost_estimate=pl.CostEstimate(
            flops=2 * padded,
            transcendentals=0,
            bytes_accessed=8 * padded,        # read x + write y, f32
        ),
        # Reuse the padded temporary slab as the output buffer (footprint win).
        # Never alias on the fast path, where x2d is a view of the caller's input.
        input_output_aliases=({0: 0} if needs_pad else {}),
    )(x2d, w, b)

    if needs_pad:
        return out2d.reshape(-1)[:n].reshape(out_shape)
    return out2d.reshape(out_shape)           # aligned path: no slice, no copy


linear_regression_forward = jax.jit(_forward)


if __name__ == "__main__":
    key = jax.random.PRNGKey(0)
    kx, kw, kb = jax.random.split(key, 3)

    # nn.Linear(1, 1) parameter shapes: weight (out=1, in=1), bias (1,).
    weight = jax.random.uniform(kw, (1, 1), minval=-1.0, maxval=1.0, dtype=jnp.float32)
    bias = jax.random.uniform(kb, (1,), minval=-1.0, maxval=1.0, dtype=jnp.float32)

    # Small ragged batch (exercises the padded path), shape (8, 1).
    x_small = jax.random.normal(kx, (8, 1), dtype=jnp.float32)
    y_small = linear_regression_forward(x_small, weight, bias)
    jax.block_until_ready(y_small)
    assert y_small.shape == (8, 1)
    assert jnp.allclose(y_small, x_small @ weight.T + bias, atol=1e-6), "mismatch (padded path)"

    # Lane-aligned batch (exercises the zero-copy fast path): 8192 = 8 rows x 1024 lanes.
    x_big = jax.random.normal(kx, (8192, 1), dtype=jnp.float32)
    y_big = linear_regression_forward(x_big, weight, bias)
    jax.block_until_ready(y_big)
    assert y_big.shape == (8192, 1)
    assert jnp.allclose(y_big, x_big @ weight.T + bias, atol=1e-6), "mismatch (aligned path)"

    print("KERNEL_OK")
</pallas_src>

<mosaic_0001>
module attributes {stable_mosaic.version = 11 : i64} {
  func.func @_linreg_kernel(%arg0: i32, %arg1: memref<8x1024xf32, #tpu.memory_space<vmem>>, %arg2: memref<1xf32, #tpu.memory_space<smem>>, %arg3: memref<1xf32, #tpu.memory_space<smem>>, %arg4: memref<8x1024xf32, #tpu.memory_space<vmem>>) attributes {dimension_semantics = [#tpu.dimension_semantics<parallel>], iteration_bounds = array<i64: 1>, scalar_prefetch = 0 : i64, scratch_operands = 0 : i64, tpu.core_type = #tpu.core_type<tc>, window_params = [{transform_indices = @transform_0, window_bounds = array<i64: 8, 1024>}, {transform_indices = @transform_1, window_bounds = array<i64: 1>}, {transform_indices = @transform_2, window_bounds = array<i64: 1>}, {transform_indices = @transform_3, window_bounds = array<i64: 8, 1024>}]} {
    %c0 = arith.constant 0 : index
    %0 = memref.load %arg2[%c0] : memref<1xf32, #tpu.memory_space<smem>>
    %c0_0 = arith.constant 0 : index
    %1 = memref.load %arg3[%c0_0] : memref<1xf32, #tpu.memory_space<smem>>
    %c0_1 = arith.constant 0 : index
    %c0_2 = arith.constant 0 : index
    %2 = vector.load %arg1[%c0_1, %c0_2] : memref<8x1024xf32, #tpu.memory_space<vmem>>, vector<8x1024xf32>
    %3 = vector.broadcast %0 : f32 to vector<8x1024xf32>
    %4 = arith.mulf %2, %3 : vector<8x1024xf32>
    %5 = vector.broadcast %1 : f32 to vector<8x1024xf32>
    %6 = arith.addf %4, %5 : vector<8x1024xf32>
    %c0_3 = arith.constant 0 : index
    %c0_4 = arith.constant 0 : index
    %7 = vector.load %arg4[%c0_3, %c0_4] : memref<8x1024xf32, #tpu.memory_space<vmem>>, vector<8x1024xf32>
    tpu.vector_store %arg4[%c0_3, %c0_4], %6 {strides = array<i32>} : memref<8x1024xf32, #tpu.memory_space<vmem>>, vector<8x1024xf32>,
    return
  }
  func.func @transform_0(%arg0: i32) -> (i32, i32) {
    %c0_i32 = arith.constant 0 : i32
    %c0_i32_0 = arith.constant 0 : i32
    return %arg0, %c0_i32 : i32, i32
  }
  func.func @transform_1(%arg0: i32) -> i32 {
    %c0_i32 = arith.constant 0 : i32
    %c0_i32_0 = arith.constant 0 : i32
    return %c0_i32 : i32
  }
  func.func @transform_2(%arg0: i32) -> i32 {
    %c0_i32 = arith.constant 0 : i32
    %c0_i32_0 = arith.constant 0 : i32
    return %c0_i32 : i32
  }
  func.func @transform_3(%arg0: i32) -> (i32, i32) {
    %c0_i32 = arith.constant 0 : i32
    %c0_i32_0 = arith.constant 0 : i32
    return %arg0, %c0_i32 : i32, i32
  }
}

</mosaic_0001>

<bundles_post_ra>
// kernel: _forward.1
= control target key start
LH: loop header
LB: loop body
LE: loop exit
PB: predicated region body
PF: predicated region fallthrough
CT: control target
= control target key end

     0   :  { %s130_s0 = inlined_call_operand.vmem [shape: f32[8,1024], index: 0, kind: input, shape index: {}, may-alias: {0,3}]   ;;  %s131_s1 = inlined_call_operand.<no memory space> [shape: f32[1], index: 1, kind: input, shape index: {}]   ;;  %s132_s2 = inlined_call_operand.<no memory space> [shape: f32[1], index: 2, kind: input, shape index: {}]   ;;  %s133_s3 = inlined_call_operand.vmem [shape: f32[8,1024], index: 3, kind: output, shape index: {}, may-alias: {0,3}]  }
   0x1   :  { %v18_v0 = vld [vmem:[%s130_s0] sm:$0xff]  ;;  %v26_v1 = vstv %s131_s1  ;;  %v35_v2 = vstv %s132_s2  ;;  %v19_v3 = vld [vmem:[%s130_s0 + $0x8] sm:$0xff] }
   0x2   :  { %v27_v4 = vmul.f32 %v26_v1, %v18_v0  ;;  %v28_v5 = vmul.f32 %v26_v1, %v19_v3  ;;  %v20_v6 = vld [vmem:[%s130_s0 + $0x10] sm:$0xff]  ;;  %v21_v7 = vld [vmem:[%s130_s0 + $0x18] sm:$0xff]  ;;  %v22_v8 = vld [vmem:[%s130_s0 + $0x20] sm:$0xff] }
   0x3   :  { %v29_v9 = vmul.f32 %v26_v1, %v20_v6  ;;  %v30_v10 = vmul.f32 %v26_v1, %v21_v7  ;;  %v31_v11 = vmul.f32 %v26_v1, %v22_v8  ;;  %v23_v12 = vld [vmem:[%s130_s0 + $0x28] sm:$0xff]  ;;  %v24_v13 = vld [vmem:[%s130_s0 + $0x30] sm:$0xff]  ;;  %v25_v14 = vld [vmem:[%s130_s0 + $0x38] sm:$0xff] }
   0x4   :  { %v36_v15 = vadd.f32 %v35_v2, %v27_v4  ;;  %v37_v16 = vadd.f32 %v35_v2, %v28_v5  ;;  %v32_v17 = vmul.f32 %v26_v1, %v23_v12  ;;  %v33_v18 = vmul.f32 %v26_v1, %v24_v13 }
   0x5   :  { %v38_v19 = vadd.f32 %v35_v2, %v29_v9  ;;  %v39_v20 = vadd.f32 %v35_v2, %v30_v10  ;;  %v40_v21 = vadd.f32 %v35_v2, %v31_v11  ;;  %v34_v22 = vmul.f32 %v26_v1, %v25_v14 }
   0x6   :  { %44 = vst [vmem:[%s133_s3] sm:$0xff] %v36_v15  ;;  %45 = vst [vmem:[%s133_s3 + $0x8] sm:$0xff] %v37_v16  ;;  %v41_v23 = vadd.f32 %v35_v2, %v32_v17  ;;  %v42_v24 = vadd.f32 %v35_v2, %v33_v18 }
   0x7   :  { %46 = vst [vmem:[%s133_s3 + $0x10] sm:$0xff] %v38_v19  ;;  %47 = vst [vmem:[%s133_s3 + $0x18] sm:$0xff] %v39_v20  ;;  %v43_v25 = vadd.f32 %v35_v2, %v34_v22 }
   0x8   :  { %48 = vst [vmem:[%s133_s3 + $0x20] sm:$0xff] %v40_v21  ;;  %49 = vst [vmem:[%s133_s3 + $0x28] sm:$0xff] %v41_v23 }
   0x9   :  { %50 = vst [vmem:[%s133_s3 + $0x30] sm:$0xff] %v42_v24  ;;  %51 = vst [vmem:[%s133_s3 + $0x38] sm:$0xff] %v43_v25 }

</bundles_post_ra>
